<compile_context>
chip_gen: v7x
topology: tpu7x:2x2x1
jax: 0.10.0
libtpu: 0.0.40
codegen_flags: <defaults>
</compile_context>

<pallas_src>
import jax
import jax.numpy as jnp
from jax import lax
from jax.experimental import pallas as pl
from jax.experimental.pallas import tpu as pltpu


def _corr_rows_kernel(x_ref, y_ref, out_ref):
    """Per-row  -cov / sqrt(var_o * var_t)  for one (tb, N) tile of rows."""
    x = x_ref[...]
    y = y_ref[...]
    if x.dtype != jnp.float32:          # only cast when actually needed
        x = x.astype(jnp.float32)
        y = y.astype(jnp.float32)

    n = x.shape[1]
    inv_n = jnp.float32(1.0 / n)

    # Single pass: five independent lane reductions (XLU), no mean -> recenter
    # dependency, everything hides under the HBM->VMEM DMA of the next tile.
    s_x = jnp.sum(x, axis=1, keepdims=True)          # (tb, 1)
    s_y = jnp.sum(y, axis=1, keepdims=True)
    s_xx = jnp.sum(x * x, axis=1, keepdims=True)
    s_yy = jnp.sum(y * y, axis=1, keepdims=True)
    s_xy = jnp.sum(x * y, axis=1, keepdims=True)

    mo = s_x * inv_n
    mt = s_y * inv_n
    var_o = s_xx * inv_n - mo * mo                   # correction=0 variance
    var_t = s_yy * inv_n - mt * mt
    cov = s_xy * inv_n - mo * mt

    # rsqrt goes to the EUP slot and removes the f32 divide from the VPU path.
    # Rows with zero variance produce inf/NaN, matching PyTorch.
    out_ref[...] = (-cov * lax.rsqrt(var_o * var_t)).astype(out_ref.dtype)


def _pick_row_tile(B, N, itemsize, tile_budget_bytes):
    """Largest row tile whose double-buffered input blocks fit the VMEM budget."""
    # 2 inputs x 2 pipeline buffers of (rows, N) resident per grid step.
    max_rows = tile_budget_bytes // (4 * N * itemsize)
    if max_rows < 8:
        # TODO(synk): for extremely wide rows add a second grid axis over N
        # (reduction axis last, 'arbitrary') with per-row partial-sum scratch.
        max_rows = 8
    if B <= max_rows:
        return B                      # single tile covering the full batch
    tb = min((max_rows // 8) * 8, B)  # keep the (8, 128) sublane alignment
    # Prefer a tile that evenly divides B (no padded trailing block).
    cand = tb
    while cand >= 8:
        if B % cand == 0:
            return cand
        cand -= 8
    return tb                         # trailing block rows are simply dropped


def correlation_loss(x, y):
    """Pallas implementation of CorrelationLoss.forward for 2-D (B, N) inputs."""
    assert x.shape == y.shape and x.ndim == 2
    B, N = x.shape
    itemsize = jnp.dtype(x.dtype).itemsize

    # Per-generation VMEM sizing: v5e/v6e ~128 MiB, v7x ~64 MiB per core.
    try:
        vmem_cap = int(pltpu.get_tpu_info().vmem_capacity_bytes)
    except Exception:
        vmem_cap = 64 * 1024 * 1024   # conservative fallback (safe on v7x)
    vmem_limit = min(vmem_cap * 3 // 4, 96 * 1024 * 1024)
    tile_budget = vmem_limit * 3 // 4  # headroom for output / scratch / padding

    tb = _pick_row_tile(B, N, itemsize, tile_budget)
    grid_rows = pl.cdiv(B, tb)

    cost = pl.CostEstimate(
        flops=8 * B * N,               # 3 products + 5 row reductions, roughly
        transcendentals=B,             # one rsqrt per row
        bytes_accessed=2 * B * N * itemsize + B * 4,
    )

    vals = pl.pallas_call(
        _corr_rows_kernel,
        out_shape=jax.ShapeDtypeStruct((B, 1), jnp.float32),
        grid_spec=pltpu.PrefetchScalarGridSpec(
            num_scalar_prefetch=0,
            grid=(grid_rows,),
            in_specs=[
                pl.BlockSpec((tb, N), lambda i: (i, 0)),
                pl.BlockSpec((tb, N), lambda i: (i, 0)),
            ],
            out_specs=pl.BlockSpec((tb, 1), lambda i: (i, 0)),
        ),
        compiler_params=pltpu.CompilerParams(
            # No cross-tile accumulator -> safe to shard across TensorCores.
            dimension_semantics=("parallel",),
            vmem_limit_bytes=int(vmem_limit),
        ),
        cost_estimate=cost,
    )(x, y)

    # Tiny final reduction (B values) in the wrapper: keeps the grid axis
    # parallel and avoids serial f32 accumulation drift across many tiles.
    return jnp.mean(vals)


def _reference(x, y):
    mo = jnp.mean(x, axis=1, keepdims=True)
    mt = jnp.mean(y, axis=1, keepdims=True)
    var_o = jnp.var(x, axis=1, keepdims=True)   # ddof=0 == correction=0
    var_t = jnp.var(y, axis=1, keepdims=True)
    cov = jnp.mean(x * y, axis=1, keepdims=True) - mo * mt
    return jnp.mean(-1.0 * cov / jnp.sqrt(var_o * var_t))


if __name__ == "__main__":
    key = jax.random.PRNGKey(0)
    kx, ky = jax.random.split(key)
    B, N = 16, 128
    x = jax.random.normal(kx, (B, N), dtype=jnp.float32)
    y = 0.5 * x + jax.random.normal(ky, (B, N), dtype=jnp.float32)

    out = correlation_loss(x, y)
    out = jax.block_until_ready(out)

    ref = _reference(x, y)
    assert jnp.allclose(out, ref, atol=1e-5, rtol=1e-5), (out, ref)
    print("KERNEL_OK")
</pallas_src>

<mosaic_0001>
module attributes {stable_mosaic.version = 11 : i64} {
  func.func @_corr_rows_kernel(%arg0: i32, %arg1: memref<16x128xf32, #tpu.memory_space<vmem>>, %arg2: memref<16x128xf32, #tpu.memory_space<vmem>>, %arg3: memref<16x1xf32, #tpu.memory_space<vmem>>) attributes {dimension_semantics = [#tpu.dimension_semantics<parallel>], iteration_bounds = array<i64: 1>, scalar_prefetch = 0 : i64, scratch_operands = 0 : i64, tpu.core_type = #tpu.core_type<tc>, window_params = [{transform_indices = @transform_0, window_bounds = array<i64: 16, 128>}, {transform_indices = @transform_1, window_bounds = array<i64: 16, 128>}, {transform_indices = @transform_2, window_bounds = array<i64: 16, 1>}]} {
    %c0 = arith.constant 0 : index
    %c0_0 = arith.constant 0 : index
    %0 = vector.load %arg1[%c0, %c0_0] : memref<16x128xf32, #tpu.memory_space<vmem>>, vector<16x128xf32>
    %c0_1 = arith.constant 0 : index
    %c0_2 = arith.constant 0 : index
    %1 = vector.load %arg2[%c0_1, %c0_2] : memref<16x128xf32, #tpu.memory_space<vmem>>, vector<16x128xf32>
    %cst = arith.constant dense<0.000000e+00> : vector<16xf32>
    %2 = vector.multi_reduction <add>, %0, %cst [1] : vector<16x128xf32> to vector<16xf32>
    %3 = vector.shape_cast %2 : vector<16xf32> to vector<16x1xf32>
    %cst_3 = arith.constant dense<0.000000e+00> : vector<16xf32>
    %4 = vector.multi_reduction <add>, %1, %cst_3 [1] : vector<16x128xf32> to vector<16xf32>
    %5 = vector.shape_cast %4 : vector<16xf32> to vector<16x1xf32>
    %6 = arith.mulf %0, %0 : vector<16x128xf32>
    %cst_4 = arith.constant dense<0.000000e+00> : vector<16xf32>
    %7 = vector.multi_reduction <add>, %6, %cst_4 [1] : vector<16x128xf32> to vector<16xf32>
    %8 = vector.shape_cast %7 : vector<16xf32> to vector<16x1xf32>
    %9 = arith.mulf %1, %1 : vector<16x128xf32>
    %cst_5 = arith.constant dense<0.000000e+00> : vector<16xf32>
    %10 = vector.multi_reduction <add>, %9, %cst_5 [1] : vector<16x128xf32> to vector<16xf32>
    %11 = vector.shape_cast %10 : vector<16xf32> to vector<16x1xf32>
    %12 = arith.mulf %0, %1 : vector<16x128xf32>
    %cst_6 = arith.constant dense<0.000000e+00> : vector<16xf32>
    %13 = vector.multi_reduction <add>, %12, %cst_6 [1] : vector<16x128xf32> to vector<16xf32>
    %14 = vector.shape_cast %13 : vector<16xf32> to vector<16x1xf32>
    %cst_7 = arith.constant 7.812500e-03 : f32
    %15 = vector.broadcast %cst_7 : f32 to vector<16x1xf32>
    %16 = arith.mulf %3, %15 : vector<16x1xf32>
    %cst_8 = arith.constant 7.812500e-03 : f32
    %17 = vector.broadcast %cst_8 : f32 to vector<16x1xf32>
    %18 = arith.mulf %5, %17 : vector<16x1xf32>
    %cst_9 = arith.constant 7.812500e-03 : f32
    %19 = vector.broadcast %cst_9 : f32 to vector<16x1xf32>
    %20 = arith.mulf %8, %19 : vector<16x1xf32>
    %21 = arith.mulf %16, %16 : vector<16x1xf32>
    %22 = arith.subf %20, %21 : vector<16x1xf32>
    %cst_10 = arith.constant 7.812500e-03 : f32
    %23 = vector.broadcast %cst_10 : f32 to vector<16x1xf32>
    %24 = arith.mulf %11, %23 : vector<16x1xf32>
    %25 = arith.mulf %18, %18 : vector<16x1xf32>
    %26 = arith.subf %24, %25 : vector<16x1xf32>
    %cst_11 = arith.constant 7.812500e-03 : f32
    %27 = vector.broadcast %cst_11 : f32 to vector<16x1xf32>
    %28 = arith.mulf %14, %27 : vector<16x1xf32>
    %29 = arith.mulf %16, %18 : vector<16x1xf32>
    %30 = arith.subf %28, %29 : vector<16x1xf32>
    %cst_12 = arith.constant 0.000000e+00 : f32
    %31 = vector.broadcast %cst_12 : f32 to vector<16x1xf32>
    %32 = arith.subf %31, %30 : vector<16x1xf32>
    %33 = arith.mulf %22, %26 : vector<16x1xf32>
    %34 = math.rsqrt %33 : vector<16x1xf32>
    %35 = arith.mulf %32, %34 : vector<16x1xf32>
    %c0_13 = arith.constant 0 : index
    %c0_14 = arith.constant 0 : index
    %36 = vector.load %arg3[%c0_13, %c0_14] : memref<16x1xf32, #tpu.memory_space<vmem>>, vector<16x1xf32>
    tpu.vector_store %arg3[%c0_13, %c0_14], %35 {strides = array<i32>} : memref<16x1xf32, #tpu.memory_space<vmem>>, vector<16x1xf32>,
    return
  }
  func.func @transform_0(%arg0: i32) -> (i32, i32) {
    %c0_i32 = arith.constant 0 : i32
    %c0_i32_0 = arith.constant 0 : i32
    return %arg0, %c0_i32 : i32, i32
  }
  func.func @transform_1(%arg0: i32) -> (i32, i32) {
    %c0_i32 = arith.constant 0 : i32
    %c0_i32_0 = arith.constant 0 : i32
    return %arg0, %c0_i32 : i32, i32
  }
  func.func @transform_2(%arg0: i32) -> (i32, i32) {
    %c0_i32 = arith.constant 0 : i32
    %c0_i32_0 = arith.constant 0 : i32
    return %arg0, %c0_i32 : i32, i32
  }
}

</mosaic_0001>

<bundles_post_ra>
// kernel: tpu_custom_call.1
= control target key start
LH: loop header
LB: loop body
LE: loop exit
PB: predicated region body
PF: predicated region fallthrough
CT: control target
= control target key end

     0   :  { %7 = vsyncpa [#allocation3], 0  ;;  %s213_s0 = inlined_call_operand.hbm [shape: f32[16,128], index: 0, kind: input, shape index: {}]   ;;  %s214_s1 = inlined_call_operand.hbm [shape: f32[16,128], index: 1, kind: input, shape index: {}]   ;;  %s215_s2 = inlined_call_operand.vmem [shape: f32[16,1], index: 2, kind: output, shape index: {}]  }
   0x1   :  { %8 = vsyncpa [#allocation5], 0  ;;  %s164_s9 = smov [#allocation2]   ;;  %s116_s13 = scalar_lea.hbm %s213_s0, 256 }
   0x2   :  { %s14_s10 = sshll.u32 %s164_s9, 4  ;;  %p117_p0 = scmp.ne.s32.totalorder %s213_s0, %s116_s13  ;;  %s15_s10 = int_to_ptr.vmem [resolvable:$true] %s14_s10 }
   0x3   :  { %p120_p1 = scmp.lt.u32.totalorder %s116_s13, %s213_s0 }
   0x5   :  { %p122_p2 = pnand %p120_p1, %p117_p0 }
   0x7   :  { %125 = shalt.err (!%p122_p2)
}
   0x8   :  { %s126_s18 = scalar_lea.vmem %s15_s10, 256  ;;  %p131_p4 = scmp.lt.s32.totalorder %s15_s10, %s15_s10 }
   0x9   :  { %p127_p3 = scmp.ne.s32.totalorder %s15_s10, %s126_s18  ;;  %p132_p5 = scmp.lt.s32.totalorder %s126_s18, %s126_s18 }
   0xb   :  { %p133_p6 = por %p132_p5, %p131_p4 }
   0xd   :  { %p134_p7 = pnand %p133_p6, %p127_p3 }
   0xf   :  { %137 = shalt.err (!%p134_p7)
}
  0x10   :  { %s165_s19 = smov 128   ;;  %s166_s20 = smov 8  }
  0x11   :  { %20 = dma.hbm_to_vmem [thread:$0]  %s213_s0, 256, %s15_s10, [#allocation3], %s165_s19, %s165_s19, %s166_s20  }
  0x12   :  { %s167_s23 = smov [#allocation4]   ;;  %s138_s27 = scalar_lea.hbm %s214_s1, 256 }
  0x13   :  { %s26_s24 = sshll.u32 %s167_s23, 4  ;;  %p139_p8 = scmp.ne.s32.totalorder %s214_s1, %s138_s27  ;;  %s27_s24 = int_to_ptr.vmem [resolvable:$true] %s26_s24 }
  0x14   :  { %p142_p9 = scmp.lt.u32.totalorder %s138_s27, %s214_s1 }
  0x16   :  { %p144_p10 = pnand %p142_p9, %p139_p8 }
  0x18   :  { %147 = shalt.err (!%p144_p10)
}
  0x19   :  { %s148_s4 = scalar_lea.vmem %s27_s24, 256  ;;  %p153_p12 = scmp.lt.s32.totalorder %s27_s24, %s27_s24 }
  0x1a   :  { %p149_p11 = scmp.ne.s32.totalorder %s27_s24, %s148_s4  ;;  %p154_p13 = scmp.lt.s32.totalorder %s148_s4, %s148_s4 }
  0x1c   :  { %p155_p0 = por %p154_p13, %p153_p12 }
  0x1e   :  { %p156_p1 = pnand %p155_p0, %p149_p11 }
  0x20   :  { %159 = shalt.err (!%p156_p1)
}
  0x21   :  { %32 = dma.hbm_to_vmem [thread:$0]  %s214_s1, 256, %s27_s24, [#allocation5], %s165_s19, %s165_s19, %s166_s20  }
  0x22   :  { %160 = dma.done.wait [#allocation3], 256  }
  0x23   :  { %161 = vsyncadd [#allocation3], 4294967040 }
  0x24   :  { %162 = dma.done.wait [#allocation5], 256  }
  0x25   :  { %163 = vsyncadd [#allocation5], 4294967040  ;;  %v41_v0 = vld [vmem:[#allocation4] sm:$0xff]  ;;  %v39_v1 = vld [vmem:[#allocation2] sm:$0xff]  ;;  %vm99_vm0 = vcmask 7168  }
  0x26   :  { %47 = vadd.xlane.f32.xlu1 %v41_v0  ;;  %43 = vadd.xlane.f32.xlu0 %v39_v1  ;;  %v42_v2 = vld [vmem:[#allocation4 + $0x8] sm:$0xff]  ;;  %v40_v3 = vld [vmem:[#allocation2 + $0x8] sm:$0xff]  ;;  %v51_v5 = vmul.f32 %v39_v1, %v39_v1  ;;  %v57_v7 = vmul.f32 %v41_v0, %v41_v0  ;;  %v63_v9 = vmul.f32 %v41_v0, %v39_v1 }
  0x27   :  { %v52_v4 = vmul.f32 %v40_v3, %v40_v3  ;;  %v58_v6 = vmul.f32 %v42_v2, %v42_v2  ;;  %v64_v8 = vmul.f32 %v42_v2, %v40_v3 }
  0x2a   :  { %49 = vadd.xlane.f32.xlu1 %v42_v2  ;;  %45 = vadd.xlane.f32.xlu0 %v40_v3 }
  0x2e   :  { %55 = vadd.xlane.f32.xlu1 %v52_v4  ;;  %53 = vadd.xlane.f32.xlu0 %v51_v5 }
  0x32   :  { %61 = vadd.xlane.f32.xlu1 %v58_v6  ;;  %59 = vadd.xlane.f32.xlu0 %v57_v7 }
  0x36   :  { %67 = vadd.xlane.f32.xlu1 %v64_v8  ;;  %65 = vadd.xlane.f32.xlu0 %v63_v9 }
  0xb3   :  { %v48_v10 = vpop.xlane.xlu1 %47  ;;  %v44_v11 = vpop.xlane.xlu0 %43 }
  0xb4   :  { %v71_v14 = vmul.f32 0.0078125, %v48_v10  ;;  %v69_v15 = vmul.f32 0.0078125, %v44_v11 }
  0xb6   :  { %v81_v22 = vmul.f32 %v71_v14, %v71_v14  ;;  %v75_v23 = vmul.f32 %v69_v15, %v69_v15  ;;  %v87_v41 = vmul.f32 %v71_v14, %v69_v15 }
  0xb7   :  { %v50_v12 = vpop.xlane.xlu1 %49  ;;  %v46_v13 = vpop.xlane.xlu0 %45 }
  0xb8   :  { %v72_v18 = vmul.f32 0.0078125, %v50_v12  ;;  %v70_v19 = vmul.f32 0.0078125, %v46_v13 }
  0xba   :  { %v82_v26 = vmul.f32 %v72_v18, %v72_v18  ;;  %v76_v27 = vmul.f32 %v70_v19, %v70_v19  ;;  %v88_v40 = vmul.f32 %v72_v18, %v70_v19 }
  0xbb   :  { %v56_v16 = vpop.xlane.xlu1 %55  ;;  %v54_v17 = vpop.xlane.xlu0 %53 }
  0xbc   :  { %v74_v20 = vmul.f32 0.0078125, %v56_v16  ;;  %v73_v21 = vmul.f32 0.0078125, %v54_v17 }
  0xbe   :  { %v78_v30 = vsub.f32 %v74_v20, %v76_v27  ;;  %v77_v31 = vsub.f32 %v73_v21, %v75_v23 }
  0xbf   :  { %v62_v24 = vpop.xlane.xlu1 %61  ;;  %v60_v25 = vpop.xlane.xlu0 %59 }
  0xc0   :  { %v80_v28 = vmul.f32 0.0078125, %v62_v24  ;;  %v79_v29 = vmul.f32 0.0078125, %v60_v25 }
  0xc2   :  { %v84_v32 = vsub.f32 %v80_v28, %v82_v26  ;;  %v83_v33 = vsub.f32 %v79_v29, %v81_v22 }
  0xc3   :  { %v68_v36 = vpop.xlane.xlu1 %67  ;;  %v66_v37 = vpop.xlane.xlu0 %65 }
  0xc4   :  { %v94_v34 = vmul.f32 %v84_v32, %v78_v30  ;;  %v93_v35 = vmul.f32 %v83_v33, %v77_v31  ;;  %v86_v38 = vmul.f32 0.0078125, %v68_v36  ;;  %v85_v39 = vmul.f32 0.0078125, %v66_v37 }
  0xc6   :  { %112 = vrsqrt.f32 %v94_v34  ;;  %v90_v42 = vsub.f32 %v86_v38, %v88_v40  ;;  %v89_v43 = vsub.f32 %v85_v39, %v87_v41 }
  0xc7   :  { %114 = vrsqrt.f32 %v93_v35 }
  0xc8   :  { %v92_v44 = vsub.f32 0.0, %v90_v42  ;;  %v91_v46 = vsub.f32 0.0, %v89_v43 }
  0xd0   :  { %v113_v45 = vpop.eup %112 }
  0xd1   :  { %v115_v47 = vpop.eup %114  ;;  %v98_v48 = vmul.f32 %v113_v45, %v92_v44 }
  0xd2   :  { %v97_v49 = vmul.f32 %v115_v47, %v91_v46 }
  0xd3   :  { %101 = vst.msk [vmem:[%s215_s2 + $0x8] sm:$0xff] %vm99_vm0, %v98_v48 }
  0xd4   :  { %100 = vst.msk [vmem:[%s215_s2] sm:$0xff] %vm99_vm0, %v97_v49 }
  0xd5   :  { %106 = vsyncpa [#allocation3], 1 }
  0xd6   :  { %107 = vsyncpa [#allocation5], 1 }

</bundles_post_ra>
